<compile_context>
chip_gen: v6e
topology: v6e:2x2x1
jax: 0.10.0
libtpu: 0.0.40
codegen_flags: <defaults>
</compile_context>

<pallas_src>
import functools

import jax
import jax.numpy as jnp
from jax.experimental import pallas as pl
from jax.experimental.pallas import tpu as pltpu

FEAT_DIM = 32          # stand-in for feat_extractor.num_features (2048 in resnet50)
META_DIM = 12
BN_EPS = 1e-5
OUT_LANES = 128        # lane-dense output width (unmasked vst); sliced to 1 in wrapper


# ---------------------------------------------------------------------------
# Per-generation VMEM budget and HW-tile selection (padded-bytes accounting).
# ---------------------------------------------------------------------------
def _gap_vmem_budget():
    """Return (max image-block bytes, scoped vmem_limit_bytes) for this chip."""
    try:
        cap = pltpu.get_tpu_info().vmem_capacity_bytes
    except Exception:
        cap = 64 << 20                    # conservative fallback: v7x per-TC VMEM
    if cap >= (128 << 20):                # v5e / v6e: 128 MiB physical VMEM
        return 14 << 20, 64 << 20
    return 8 << 20, 48 << 20              # v7x: 64 MiB per TensorCore


def _choose_hw_tile(hw, n, c, max_block_bytes):
    """Largest lane-aligned (multiple-of-128) tile dividing HW whose *padded*
    f32 VMEM footprint (C rounded up to 8 sublanes) fits max_block_bytes.
    Pallas double-buffers; the budget is for one buffer, the caps above leave
    2x headroom plus output/scratch/compiler scratch."""
    c_pad = -(-c // 8) * 8
    per_lane_col_bytes = n * c_pad * 4
    best = None
    t = 128
    while t <= hw:
        if hw % t == 0 and per_lane_col_bytes * t <= max_block_bytes:
            best = t
        t += 128
    if best is None:
        # No fitting 128-multiple divisor: fall back to the smallest legal block.
        best = 128 if hw % 128 == 0 else hw   # block dim == full dim is allowed
    return best


# ---------------------------------------------------------------------------
# Fused kernel: tiled GAP over H*W (mem-bound) + tail on the last step.
# ---------------------------------------------------------------------------
def fused_kernel(img_ref, meta_ref, wf_ref, vf_ref, vm_ref, out_ref, acc_ref):
    j = pl.program_id(0)

    # ---- GAP partial sum for this (N, C, thw) f32 tile: lane (XLU) reduce ----
    part = jnp.sum(img_ref[...], axis=-1)                  # (N, C) f32

    @pl.when(j == 0)
    def _():
        acc_ref[...] = part                                # write first partial directly

    @pl.when(j > 0)
    def _():
        acc_ref[...] += part

    # ---- tail runs once, on the last HW-reduction step ----
    @pl.when(j == pl.num_programs(0) - 1)
    def _():
        # Synthetic feature head: Linear C->F on the MXU, bf16 operands,
        # f32 accumulate.  1/HW is folded into wf, so the raw HW *sum* feeds
        # the matmul directly (no finalize multiply).
        feat = (jnp.dot(acc_ref[...].astype(jnp.bfloat16), wf_ref[...],
                        preferred_element_type=jnp.float32)
                + vf_ref[0:1, :])                          # (N, F)
        meta = meta_ref[...]                               # (N, M)

        # BatchNorm1d over cat((feat, meta), 1), training-mode batch stats.
        # BN is per-feature, so the split form equals the concat form.
        # Two-pass variance (no E[x^2]-mu^2 cancellation).
        def bn(x, gamma, beta):
            mu = jnp.mean(x, axis=0, keepdims=True)
            d = x - mu
            var = jnp.mean(d * d, axis=0, keepdims=True)
            return d * jax.lax.rsqrt(var + BN_EPS) * gamma + beta

        xf = bn(feat, vf_ref[1:2, :], vf_ref[2:3, :])      # (N, F)
        xm = bn(meta, vm_ref[0:1, :], vm_ref[1:2, :])      # (N, M)

        # Dropout(p=0.5): eval-mode identity (see TODO in header).

        # fc: Linear(F+M -> 1), split across the concat boundary.
        # Output dim 1 -> VPU multiply + lane reduce (no 1-column MXU dots).
        y = (jnp.sum(xf * vf_ref[3:4, :], axis=1, keepdims=True)
             + jnp.sum(xm * vm_ref[2:3, :], axis=1, keepdims=True)
             + vm_ref[3:4, 0:1])                           # (N, 1)

        # loss == 'MSE': sigmoid * 100; lane-dense (N, 128) store.
        out_ref[...] = jnp.broadcast_to(jax.nn.sigmoid(y) * 100.0, out_ref.shape)


# ---------------------------------------------------------------------------
# Parameters and forward.
# ---------------------------------------------------------------------------
def make_params(key, in_ch, feat_dim=FEAT_DIM, meta_dim=META_DIM):
    ks = jax.random.split(key, 4)
    wf = jax.random.normal(ks[0], (in_ch, feat_dim), jnp.float32) * 0.1
    bf = jax.random.normal(ks[1], (1, feat_dim), jnp.float32) * 0.1
    # BatchNorm1d init: gamma=1, beta=0 (split into feat / meta slices).
    gamma_f = jnp.ones((1, feat_dim), jnp.float32)
    beta_f = jnp.zeros((1, feat_dim), jnp.float32)
    gamma_m = jnp.ones((1, meta_dim), jnp.float32)
    beta_m = jnp.zeros((1, meta_dim), jnp.float32)
    # fc: Linear(feat_dim + meta_dim, 1), stored as (1, D) rows for the
    # in-kernel VPU multiply + lane-reduce formulation.
    wfc = jax.random.normal(ks[2], (feat_dim + meta_dim, 1), jnp.float32) * 0.1
    wfc_f = wfc[:feat_dim].T       # (1, F)
    wfc_m = wfc[feat_dim:].T       # (1, M)
    bfc = jax.random.normal(ks[3], (1, 1), jnp.float32) * 0.1
    return (wf, bf, gamma_f, beta_f, gamma_m, beta_m, wfc_f, wfc_m, bfc)


@functools.partial(jax.jit, static_argnames=("hw_tile",))
def baseline2_forward(img_nchw, meta, params, hw_tile=None):
    N, C, H, W = img_nchw.shape
    HW = H * W
    M = meta.shape[1]
    wf, bf, gamma_f, beta_f, gamma_m, beta_m, wfc_f, wfc_m, bfc = params
    F = wf.shape[1]

    # (N, C, H*W) is a FREE reshape of NCHW: no transpose, no dtype cast.
    img = img_nchw.reshape(N, C, HW)

    # Fold 1/HW into the C->F weights and pre-cast them to bf16 (MXU-native).
    wf_eff = (wf * (1.0 / HW)).astype(jnp.bfloat16)        # (C, F)

    # Pack the tiny per-feature tail params into two arrays (fewer tiny DMAs).
    vec_f = jnp.concatenate([bf, gamma_f, beta_f, wfc_f], axis=0)           # (4, F)
    vec_m = jnp.concatenate(
        [gamma_m, beta_m, wfc_m, jnp.pad(bfc, ((0, 0), (0, M - 1)))], axis=0)  # (4, M)

    max_block_bytes, vmem_limit = _gap_vmem_budget()
    if hw_tile is not None:
        assert HW % hw_tile == 0 and (hw_tile % 128 == 0 or hw_tile == HW)
        thw = hw_tile
    else:
        thw = _choose_hw_tile(HW, N, C, max_block_bytes)

    out = pl.pallas_call(
        fused_kernel,
        out_shape=jax.ShapeDtypeStruct((N, OUT_LANES), jnp.float32),
        grid_spec=pltpu.PrefetchScalarGridSpec(
            num_scalar_prefetch=0,
            grid=(HW // thw,),
            in_specs=[
                pl.BlockSpec((N, C, thw), lambda j: (0, 0, j)),   # tiled image (H*W on lanes)
                pl.BlockSpec((N, M), lambda j: (0, 0)),           # resident small inputs
                pl.BlockSpec((C, F), lambda j: (0, 0)),
                pl.BlockSpec((4, F), lambda j: (0, 0)),
                pl.BlockSpec((4, M), lambda j: (0, 0)),
            ],
            out_specs=pl.BlockSpec((N, OUT_LANES), lambda j: (0, 0)),
            scratch_shapes=[pltpu.VMEM((N, C), jnp.float32)]),
        compiler_params=pltpu.CompilerParams(
            dimension_semantics=("arbitrary",),
            vmem_limit_bytes=vmem_limit),
    )(img, meta, wf_eff, vec_f, vec_m)
    return out[:, :1]                                      # (N, 1)


def baseline2_reference(img_nchw, meta, params):
    """Pure-JAX reference mirroring the kernel math (f32 GAP sum, 1/HW folded
    into bf16 feature weights, full-batch BN, fc, sigmoid*100)."""
    wf, bf, gamma_f, beta_f, gamma_m, beta_m, wfc_f, wfc_m, bfc = params
    N, C, H, W = img_nchw.shape
    HW = H * W
    s = jnp.sum(img_nchw.reshape(N, C, HW).astype(jnp.float32), axis=-1)    # (N, C)
    wf_eff = (wf * (1.0 / HW)).astype(jnp.bfloat16)
    feat = jnp.dot(s.astype(jnp.bfloat16), wf_eff,
                   preferred_element_type=jnp.float32) + bf
    x = jnp.concatenate([feat, meta], axis=1)
    mu = jnp.mean(x, axis=0, keepdims=True)
    var = jnp.mean((x - mu) ** 2, axis=0, keepdims=True)
    gamma = jnp.concatenate([gamma_f, gamma_m], axis=1)
    beta = jnp.concatenate([beta_f, beta_m], axis=1)
    xn = (x - mu) * jax.lax.rsqrt(var + BN_EPS) * gamma + beta
    w = jnp.concatenate([wfc_f, wfc_m], axis=1)            # (1, F+M)
    y = xn @ w.T + bfc
    return jax.nn.sigmoid(y) * 100.0


if __name__ == "__main__":
    key = jax.random.PRNGKey(0)
    k_img, k_meta, k_par = jax.random.split(key, 3)

    N, C, H, W = 2, 4, 16, 16
    img = jax.random.normal(k_img, (N, C, H, W), jnp.float32)       # NCHW
    meta = jax.random.normal(k_meta, (N, META_DIM), jnp.float32)
    params = make_params(k_par, C)

    # hw_tile=128 -> 2 grid steps on the HW reduction axis (exercises the
    # pipelined accumulate + pl.when finalize/fused-tail path).
    out = baseline2_forward(img, meta, params, hw_tile=128)
    out = jax.block_until_ready(out)
    assert out.shape == (N, 1) and out.dtype == jnp.float32

    ref = baseline2_reference(img, meta, params)
    assert jnp.allclose(out, ref, rtol=2e-3, atol=1e-1), (out, ref)

    # Also exercise the automatic tile chooser (single-step grid).
    out2 = jax.block_until_ready(baseline2_forward(img, meta, params))
    assert jnp.allclose(out2, ref, rtol=2e-3, atol=1e-1), (out2, ref)

    print("KERNEL_OK")
</pallas_src>

<mosaic_0001>
module attributes {stable_mosaic.version = 11 : i64} {
  func.func @fused_kernel(%arg0: i32, %arg1: memref<2x4x128xf32, #tpu.memory_space<vmem>>, %arg2: memref<2x12xf32, #tpu.memory_space<vmem>>, %arg3: memref<4x32xbf16, #tpu.memory_space<vmem>>, %arg4: memref<4x32xf32, #tpu.memory_space<vmem>>, %arg5: memref<4x12xf32, #tpu.memory_space<vmem>>, %arg6: memref<2x128xf32, #tpu.memory_space<vmem>>, %arg7: memref<2x4xf32, #tpu.memory_space<vmem>>) attributes {dimension_semantics = [#tpu.dimension_semantics<arbitrary>], iteration_bounds = array<i64: 2>, scalar_prefetch = 0 : i64, scratch_operands = 1 : i64, tpu.core_type = #tpu.core_type<tc>, window_params = [{transform_indices = @transform_0, window_bounds = array<i64: 2, 4, 128>}, {pipeline_mode = #tpu.pipeline_mode<synchronous>, transform_indices = @transform_1, window_bounds = array<i64: 2, 12>}, {pipeline_mode = #tpu.pipeline_mode<synchronous>, transform_indices = @transform_2, window_bounds = array<i64: 4, 32>}, {pipeline_mode = #tpu.pipeline_mode<synchronous>, transform_indices = @transform_3, window_bounds = array<i64: 4, 32>}, {pipeline_mode = #tpu.pipeline_mode<synchronous>, transform_indices = @transform_4, window_bounds = array<i64: 4, 12>}, {pipeline_mode = #tpu.pipeline_mode<synchronous>, transform_indices = @transform_5, window_bounds = array<i64: 2, 128>}]} {
    %c0 = arith.constant 0 : index
    %c0_0 = arith.constant 0 : index
    %c0_1 = arith.constant 0 : index
    %0 = vector.load %arg1[%c0, %c0_0, %c0_1] : memref<2x4x128xf32, #tpu.memory_space<vmem>>, vector<2x4x128xf32>
    %cst = arith.constant dense<0.000000e+00> : vector<2x4xf32>
    %1 = vector.multi_reduction <add>, %0, %cst [2] : vector<2x4x128xf32> to vector<2x4xf32>
    %c0_i32 = arith.constant 0 : i32
    %2 = arith.cmpi eq, %arg0, %c0_i32 : i32
    %3 = arith.extui %2 : i1 to i32
    %c0_i32_2 = arith.constant 0 : i32
    %4 = arith.cmpi ne, %3, %c0_i32_2 : i32
    scf.if %4 {
      %c0_6 = arith.constant 0 : index
      %c0_7 = arith.constant 0 : index
      %11 = vector.load %arg7[%c0_6, %c0_7] : memref<2x4xf32, #tpu.memory_space<vmem>>, vector<2x4xf32>
      tpu.vector_store %arg7[%c0_6, %c0_7], %1 {strides = array<i32>} : memref<2x4xf32, #tpu.memory_space<vmem>>, vector<2x4xf32>,
    } else {
    }
    %c0_i32_3 = arith.constant 0 : i32
    %5 = arith.cmpi sgt, %arg0, %c0_i32_3 : i32
    %6 = arith.extui %5 : i1 to i32
    %c0_i32_4 = arith.constant 0 : i32
    %7 = arith.cmpi ne, %6, %c0_i32_4 : i32
    scf.if %7 {
      %c0_6 = arith.constant 0 : index
      %c0_7 = arith.constant 0 : index
      %11 = vector.load %arg7[%c0_6, %c0_7] : memref<2x4xf32, #tpu.memory_space<vmem>>, vector<2x4xf32>
      %12 = arith.addf %11, %1 : vector<2x4xf32>
      %c0_8 = arith.constant 0 : index
      %c0_9 = arith.constant 0 : index
      %13 = vector.load %arg7[%c0_8, %c0_9] : memref<2x4xf32, #tpu.memory_space<vmem>>, vector<2x4xf32>
      tpu.vector_store %arg7[%c0_8, %c0_9], %12 {strides = array<i32>} : memref<2x4xf32, #tpu.memory_space<vmem>>, vector<2x4xf32>,
    } else {
    }
    %c1_i32 = arith.constant 1 : i32
    %8 = arith.cmpi eq, %arg0, %c1_i32 : i32
    %9 = arith.extui %8 : i1 to i32
    %c0_i32_5 = arith.constant 0 : i32
    %10 = arith.cmpi ne, %9, %c0_i32_5 : i32
    scf.if %10 {
      %c0_6 = arith.constant 0 : index
      %c0_7 = arith.constant 0 : index
      %11 = vector.load %arg7[%c0_6, %c0_7] : memref<2x4xf32, #tpu.memory_space<vmem>>, vector<2x4xf32>
      %12 = arith.truncf %11 : vector<2x4xf32> to vector<2x4xbf16>
      %c0_8 = arith.constant 0 : index
      %c0_9 = arith.constant 0 : index
      %13 = vector.load %arg3[%c0_8, %c0_9] : memref<4x32xbf16, #tpu.memory_space<vmem>>, vector<4x32xbf16>
      %cst_10 = arith.constant dense<0.000000e+00> : vector<2x32xf32>
      %14 = tpu.matmul %12, %13, %cst_10 {dimension_numbers = #tpu.dot_dimension_numbers<[1], [0], [0], [1], [0, 0, 1, 1], [], []>} : vector<2x4xbf16>, vector<4x32xbf16>, vector<2x32xf32> -> vector<2x32xf32>
      %c0_11 = arith.constant 0 : index
      %c0_12 = arith.constant 0 : index
      %15 = vector.load %arg4[%c0_11, %c0_12] : memref<4x32xf32, #tpu.memory_space<vmem>>, vector<1x32xf32>
      %16 = vector.broadcast %15 : vector<1x32xf32> to vector<2x32xf32>
      %17 = arith.addf %14, %16 : vector<2x32xf32>
      %c0_13 = arith.constant 0 : index
      %c0_14 = arith.constant 0 : index
      %18 = vector.load %arg2[%c0_13, %c0_14] : memref<2x12xf32, #tpu.memory_space<vmem>>, vector<2x12xf32>
      %c1 = arith.constant 1 : index
      %c0_15 = arith.constant 0 : index
      %19 = vector.load %arg4[%c1, %c0_15] : memref<4x32xf32, #tpu.memory_space<vmem>>, vector<1x32xf32>
      %c2 = arith.constant 2 : index
      %c0_16 = arith.constant 0 : index
      %20 = vector.load %arg4[%c2, %c0_16] : memref<4x32xf32, #tpu.memory_space<vmem>>, vector<1x32xf32>
      %cst_17 = arith.constant dense<0.000000e+00> : vector<32xf32>
      %21 = vector.multi_reduction <add>, %17, %cst_17 [0] : vector<2x32xf32> to vector<32xf32>
      %22 = vector.shape_cast %21 : vector<32xf32> to vector<1x32xf32>
      %cst_18 = arith.constant 2.000000e+00 : f32
      %23 = vector.broadcast %cst_18 : f32 to vector<1x32xf32>
      %24 = arith.divf %22, %23 : vector<1x32xf32>
      %25 = vector.broadcast %24 : vector<1x32xf32> to vector<2x32xf32>
      %26 = arith.subf %17, %25 : vector<2x32xf32>
      %27 = arith.mulf %26, %26 : vector<2x32xf32>
      %cst_19 = arith.constant dense<0.000000e+00> : vector<32xf32>
      %28 = vector.multi_reduction <add>, %27, %cst_19 [0] : vector<2x32xf32> to vector<32xf32>
      %29 = vector.shape_cast %28 : vector<32xf32> to vector<1x32xf32>
      %cst_20 = arith.constant 2.000000e+00 : f32
      %30 = vector.broadcast %cst_20 : f32 to vector<1x32xf32>
      %31 = arith.divf %29, %30 : vector<1x32xf32>
      %cst_21 = arith.constant 9.99999974E-6 : f32
      %32 = vector.broadcast %cst_21 : f32 to vector<1x32xf32>
      %33 = arith.addf %31, %32 : vector<1x32xf32>
      %34 = math.rsqrt %33 : vector<1x32xf32>
      %35 = vector.broadcast %34 : vector<1x32xf32> to vector<2x32xf32>
      %36 = arith.mulf %26, %35 : vector<2x32xf32>
      %37 = vector.broadcast %19 : vector<1x32xf32> to vector<2x32xf32>
      %38 = arith.mulf %36, %37 : vector<2x32xf32>
      %39 = vector.broadcast %20 : vector<1x32xf32> to vector<2x32xf32>
      %40 = arith.addf %38, %39 : vector<2x32xf32>
      %c0_22 = arith.constant 0 : index
      %c0_23 = arith.constant 0 : index
      %41 = vector.load %arg5[%c0_22, %c0_23] : memref<4x12xf32, #tpu.memory_space<vmem>>, vector<1x12xf32>
      %c1_24 = arith.constant 1 : index
      %c0_25 = arith.constant 0 : index
      %42 = vector.load %arg5[%c1_24, %c0_25] : memref<4x12xf32, #tpu.memory_space<vmem>>, vector<1x12xf32>
      %cst_26 = arith.constant dense<0.000000e+00> : vector<12xf32>
      %43 = vector.multi_reduction <add>, %18, %cst_26 [0] : vector<2x12xf32> to vector<12xf32>
      %44 = vector.shape_cast %43 : vector<12xf32> to vector<1x12xf32>
      %cst_27 = arith.constant 2.000000e+00 : f32
      %45 = vector.broadcast %cst_27 : f32 to vector<1x12xf32>
      %46 = arith.divf %44, %45 : vector<1x12xf32>
      %47 = vector.broadcast %46 : vector<1x12xf32> to vector<2x12xf32>
      %48 = arith.subf %18, %47 : vector<2x12xf32>
      %49 = arith.mulf %48, %48 : vector<2x12xf32>
      %cst_28 = arith.constant dense<0.000000e+00> : vector<12xf32>
      %50 = vector.multi_reduction <add>, %49, %cst_28 [0] : vector<2x12xf32> to vector<12xf32>
      %51 = vector.shape_cast %50 : vector<12xf32> to vector<1x12xf32>
      %cst_29 = arith.constant 2.000000e+00 : f32
      %52 = vector.broadcast %cst_29 : f32 to vector<1x12xf32>
      %53 = arith.divf %51, %52 : vector<1x12xf32>
      %cst_30 = arith.constant 9.99999974E-6 : f32
      %54 = vector.broadcast %cst_30 : f32 to vector<1x12xf32>
      %55 = arith.addf %53, %54 : vector<1x12xf32>
      %56 = math.rsqrt %55 : vector<1x12xf32>
      %57 = vector.broadcast %56 : vector<1x12xf32> to vector<2x12xf32>
      %58 = arith.mulf %48, %57 : vector<2x12xf32>
      %59 = vector.broadcast %41 : vector<1x12xf32> to vector<2x12xf32>
      %60 = arith.mulf %58, %59 : vector<2x12xf32>
      %61 = vector.broadcast %42 : vector<1x12xf32> to vector<2x12xf32>
      %62 = arith.addf %60, %61 : vector<2x12xf32>
      %c3 = arith.constant 3 : index
      %c0_31 = arith.constant 0 : index
      %63 = vector.load %arg4[%c3, %c0_31] : memref<4x32xf32, #tpu.memory_space<vmem>>, vector<1x32xf32>
      %64 = vector.broadcast %63 : vector<1x32xf32> to vector<2x32xf32>
      %65 = arith.mulf %40, %64 : vector<2x32xf32>
      %cst_32 = arith.constant dense<0.000000e+00> : vector<2xf32>
      %66 = vector.multi_reduction <add>, %65, %cst_32 [1] : vector<2x32xf32> to vector<2xf32>
      %67 = vector.shape_cast %66 : vector<2xf32> to vector<2x1xf32>
      %c2_33 = arith.constant 2 : index
      %c0_34 = arith.constant 0 : index
      %68 = vector.load %arg5[%c2_33, %c0_34] : memref<4x12xf32, #tpu.memory_space<vmem>>, vector<1x12xf32>
      %69 = vector.broadcast %68 : vector<1x12xf32> to vector<2x12xf32>
      %70 = arith.mulf %62, %69 : vector<2x12xf32>
      %cst_35 = arith.constant dense<0.000000e+00> : vector<2xf32>
      %71 = vector.multi_reduction <add>, %70, %cst_35 [1] : vector<2x12xf32> to vector<2xf32>
      %72 = vector.shape_cast %71 : vector<2xf32> to vector<2x1xf32>
      %73 = arith.addf %67, %72 : vector<2x1xf32>
      %c3_36 = arith.constant 3 : index
      %c0_37 = arith.constant 0 : index
      %74 = vector.load %arg5[%c3_36, %c0_37] : memref<4x12xf32, #tpu.memory_space<vmem>>, vector<1x1xf32>
      %75 = vector.broadcast %74 : vector<1x1xf32> to vector<2x1xf32>
      %76 = arith.addf %73, %75 : vector<2x1xf32>
      %77 = arith.negf %76 : vector<2x1xf32>
      %78 = math.exp %77 : vector<2x1xf32>
      %cst_38 = arith.constant 1.000000e+00 : f32
      %79 = vector.broadcast %cst_38 : f32 to vector<2x1xf32>
      %80 = arith.addf %79, %78 : vector<2x1xf32>
      %81 = arith.divf %79, %80 : vector<2x1xf32>
      %cst_39 = arith.constant 1.000000e+02 : f32
      %82 = vector.broadcast %cst_39 : f32 to vector<2x1xf32>
      %83 = arith.mulf %81, %82 : vector<2x1xf32>
      %84 = vector.shape_cast %83 : vector<2x1xf32> to vector<2x1xf32>
      %85 = vector.broadcast %84 : vector<2x1xf32> to vector<2x128xf32>
      %c0_40 = arith.constant 0 : index
      %c0_41 = arith.constant 0 : index
      %86 = vector.load %arg6[%c0_40, %c0_41] : memref<2x128xf32, #tpu.memory_space<vmem>>, vector<2x128xf32>
      tpu.vector_store %arg6[%c0_40, %c0_41], %85 {strides = array<i32>} : memref<2x128xf32, #tpu.memory_space<vmem>>, vector<2x128xf32>,
    } else {
    }
    return
  }
  func.func @transform_0(%arg0: i32) -> (i32, i32, i32) {
    %c0_i32 = arith.constant 0 : i32
    %c0_i32_0 = arith.constant 0 : i32
    %c0_i32_1 = arith.constant 0 : i32
    return %c0_i32, %c0_i32_0, %arg0 : i32, i32, i32
  }
  func.func @transform_1(%arg0: i32) -> (i32, i32) {
    %c0_i32 = arith.constant 0 : i32
    %c0_i32_0 = arith.constant 0 : i32
    %c0_i32_1 = arith.constant 0 : i32
    return %c0_i32, %c0_i32_0 : i32, i32
  }
  func.func @transform_2(%arg0: i32) -> (i32, i32) {
    %c0_i32 = arith.constant 0 : i32
    %c0_i32_0 = arith.constant 0 : i32
    %c0_i32_1 = arith.constant 0 : i32
    return %c0_i32, %c0_i32_0 : i32, i32
  }
  func.func @transform_3(%arg0: i32) -> (i32, i32) {
    %c0_i32 = arith.constant 0 : i32
    %c0_i32_0 = arith.constant 0 : i32
    %c0_i32_1 = arith.constant 0 : i32
    return %c0_i32, %c0_i32_0 : i32, i32
  }
  func.func @transform_4(%arg0: i32) -> (i32, i32) {
    %c0_i32 = arith.constant 0 : i32
    %c0_i32_0 = arith.constant 0 : i32
    %c0_i32_1 = arith.constant 0 : i32
    return %c0_i32, %c0_i32_0 : i32, i32
  }
  func.func @transform_5(%arg0: i32) -> (i32, i32) {
    %c0_i32 = arith.constant 0 : i32
    %c0_i32_0 = arith.constant 0 : i32
    %c0_i32_1 = arith.constant 0 : i32
    return %c0_i32, %c0_i32_0 : i32, i32
  }
}

</mosaic_0001>

<bundles_post_ra>
// kernel: baseline2_forward.1
= control target key start
LH: loop header
LB: loop body
LE: loop exit
PB: predicated region body
PF: predicated region fallthrough
CT: control target
= control target key end

     0   :  { %s637_s18 = smov 0   ;;  %s639_s19 = smov 0   ;;  %s718_s0 = inlined_call_operand.vmem [shape: f32[2,4,256], index: 0, kind: input, shape index: {}]   ;;  %s719_s1 = inlined_call_operand.vmem [shape: f32[2,12], index: 1, kind: input, shape index: {}]   ;;  %s720_s2 = inlined_call_operand.vmem [shape: bf16[4,32], index: 2, kind: input, shape index: {}]   ;;  %s721_s3 = inlined_call_operand.vmem [shape: f32[4,32], index: 3, kind: input, shape index: {}]   ;;  %s722_s4 = inlined_call_operand.vmem [shape: f32[4,12], index: 4, kind: input, shape index: {}]   ;;  %s723_s5 = inlined_call_operand.vmem [shape: f32[2,128], index: 5, kind: output, shape index: {}]  }
   0x1   :  { %s641_s20 = smov 0  }
   0x2 LB: > { %s650_s21 = sadd.s32 4294967295, %s602_s20   ;;  %s652_s22 = sadd.s32 1, %s602_s20   ;;  %s602_s20 = sphi %s641_s20, %s726_s20   ;;  %s598_s19 = sphi %s639_s19, %s725_s19   ;;  %s594_s18 = sphi %s637_s18, %s724_s18  }
   0x3   : > { %s19_s23 = ssub.s32 %s602_s20, %s652_s22  ;;  %s22_s24 = sadd.s32 1, %s598_s19 }
   0x4   : > { %p20_p0 = scmp.eq.s32.totalorder %s19_s23, 0  ;;  %p29_p1 = scmp.ne.s32.totalorder %s598_s19, %s594_s18 }
   0x5   : > { %p30_p2 = scmp.eq.s32.totalorder %s602_s20, 0  ;;  %p515_p4 = scmp.ge.s32.totalorder %s602_s20, 2 }
   0x6   : > { %s659_s25 = scalar_select %p20_p0, %s598_s19, %s22_s24  }
   0x7   : > { %p31_p3 = por %p30_p2, %p29_p1  ;;  %172 = sbr.rel (%p515_p4) target bundleno = 17 (0x11), region = 32 }
   0xc   : > { %175 = sbr.rel (!%p31_p3) target bundleno = 17 (0x11), region = 36  ;;  %s177_s26 = sand.u32 (%p31_p3), 1, %s598_s19  }
   0xd   : > { %s517_s27 = sshll.u32 (%p31_p3), %s602_s20, 2  ;;  %s516_s28 = sshll.u32 (%p31_p3), %s177_s26, 3 }
   0xe   : > { %s181_s6 = scalar_lea.vmem (%p31_p3), %s718_s0, %s517_s27  ;;  %s179_s7 = scalar_lea.vmem (%p31_p3), [#allocation3], %s516_s28 }
   0xf   : > { %v198_v0 = vld [vmem:[%s181_s6] sm:$0xf] (%p31_p3)  ;;  %v200_v1 = vld [vmem:[%s181_s6 + $0x8] sm:$0xf] (%p31_p3) }
  0x10   : > { %199 = vst [vmem:[%s179_s7] sm:$0xf] (%p31_p3), %v198_v0  ;;  %201 = vst [vmem:[%s179_s7 + $0x4] sm:$0xf] (%p31_p3), %v200_v1 }
  0x11 PF: > { %p518_p5 = scmp.ge.s32.totalorder %s602_s20, 1  ;;  %p228_p6 = scmp.lt.s32.totalorder %s602_s20, 3 }
  0x13   : > { %p229_p7 = pnand %p518_p5, %p228_p6 }
  0x14   : > { %s235_s8 = sand.u32 (!%p229_p7), 1, %s594_s18   ;;  %p520_p8 = scmp.ne.s32.totalorder (!%p229_p7), %s650_s21, 0 }
  0x15   : > { %232 = sbr.rel (%p229_p7) target bundleno = 770 (0x302), region = 77  ;;  %s519_s9 = sshll.u32 (!%p229_p7), %s235_s8, 3 }
  0x16   : > { %s237_s10 = scalar_lea.vmem (!%p229_p7), [#allocation3], %s519_s9 }
  0x1a   : > { %vm260_vm0 = vcmask 1043456   ;;  %v258_v2 = vld [vmem:[%s237_s10] sm:$0xf]  ;;  %v259_v3 = vld [vmem:[%s237_s10 + $0x4] sm:$0xf] }
  0x1b   : > { %v261_v4 = vsel %vm260_vm0, %v258_v2, 0.0  ;;  %v264_v5 = vsel %vm260_vm0, %v259_v3, 0.0 }
  0x1c   : > { %262 = vadd.xlane.f32.xlu0 %v261_v4 }
  0x20   : > { %265 = vadd.xlane.f32.xlu0 %v264_v5 }
  0xa5   : > { %v263_v6 = vpop.xlane.xlu0 %262  ;;  %270 = sbr.rel (%p520_p8) target bundleno = 180 (0xb4), region = 85 }
  0xa9   : > { %v266_v7 = vpop.xlane.xlu0 %265 }
  0xaa   : > { %v273_v8 = vlaneseq  ;;  %vm283_vm1 = vcmask 1041409   ;;  %vm286_vm2 = vcmask 25600  }
  0xac   : > { %v274_v9 = vand.u32 127, %v273_v8  ;;  %v276_v10 = vshrl.u32 %v273_v8, 7 }
  0xae   : > { %v277_v11 = vsub.s32 %v274_v9, %v276_v10 }
  0xb0   : > { %v278_v12 = vrot.slane %v263_v6, %v277_v11  ;;  %v282_v13 = vrot.slane %v266_v7, %v277_v11 }
  0xb2   : > { %v284_v14 = vsel %vm283_vm1, %v282_v13, %v278_v12 }
  0xb3   : > { %287 = vst.msk [vmem:[#allocation2] sm:$0x3] %vm286_vm2, %v284_v14 }
  0xb4 PF: > { %p521_p9 = scmp.le.s32.totalorder %s650_s21, 0 }
  0xb6   : > { %291 = sbr.rel (%p521_p9) target bundleno = 199 (0xc7), region = 89 }
  0xbb   : > { %v295_v15 = vlaneseq  ;;  %vm305_vm3 = vcmask 1041409   ;;  %v292_v19 = vld [vmem:[#allocation2] sm:$0x3]  ;;  %vm309_vm4 = vcmask 25600  }
  0xbd   : > { %v296_v16 = vand.u32 127, %v295_v15  ;;  %v298_v17 = vshrl.u32 %v295_v15, 7 }
  0xbf   : > { %v299_v18 = vsub.s32 %v296_v16, %v298_v17 }
  0xc1   : > { %v300_v20 = vrot.slane %v263_v6, %v299_v18  ;;  %v304_v21 = vrot.slane %v266_v7, %v299_v18 }
  0xc3   : > { %v306_v22 = vsel %vm305_vm3, %v304_v21, %v300_v20 }
  0xc4   : > { %v308_v23 = vadd.f32 %v306_v22, %v292_v19 }
  0xc6   : > { %310 = vst.msk [vmem:[#allocation2] sm:$0x3] %vm309_vm4, %v308_v23 }
  0xc7 PF: > { %p522_p10 = scmp.ne.s32.totalorder %s650_s21, 1 }
  0xc9   : > { %314 = sbr.rel (%p522_p10) target bundleno = 770 (0x302), region = 93 }
  0xce   : > { %v317_v24 = vld [vmem:[%s720_s2] sm:$0x3]  ;;  %vm327_vm5 = vcmask 1041408   ;;  %v604_v25 = vmov 0.0   ;;  %vm605_vm6 = vmmov 0   ;;  %vm323_vm7 = vcmask 31744  }
  0xcf   : > { %537 = vmatprep.subr.bf16.mxu0 %v604_v25  ;;  %v329_v26 = vsel %vm327_vm5, %v317_v24, 0  ;;  %539 = vmatprep.mubr.msk.bf16.mxu0 %vm605_vm6, %v604_v25  ;;  %v315_v27 = vld [vmem:[#allocation2] sm:$0x3]  ;;  %vm409_vm8 = vcmask 91136   ;;  %vm374_vm9 = vcmask 254976  }
  0xd0   : > { %538 = vmatpush3.bf16.msra.mxu0 %v329_v26  ;;  %v316_v28 = vpack.c.bf16 %v315_v27, %v315_v27  ;;  %v371_v29 = vld [vmem:[%s719_s1] sm:$0x3]  ;;  %v526_v18 = vld [vmem:[%s721_s3 + $0x2] ss:$0 sm:$0xff]  ;;  %v529_v21 = vld [vmem:[%s721_s3 + $0x3] ss:$0 sm:$0xff] }
  0xd1   : > { %v410_v30 = vsel %vm409_vm8, %v371_v29, 0.0  ;;  %v523_v41 = vld [vmem:[%s721_s3] ss:$0 sm:$0xff]  ;;  %v525_v15 = vld [vmem:[%s721_s3 + $0x1] ss:$0 sm:$0xff] }
  0xd2   : > { %v411_v31 = vrot.slane %v410_v30, 4  ;;  %v527_v12 = vld [vmem:[%s722_s4] ss:$0 sm:$0xff]  ;;  %v528_v16 = vld [vmem:[%s722_s4 + $0x1] ss:$0 sm:$0xff] }
  0xd3   : > { %540 = vmatmul.mubr.msk.bf16.vlgmr.msra.gmra.mxu0 %vm323_vm7, %v316_v28  ;;  %v530_v22 = vld [vmem:[%s722_s4 + $0x2] ss:$0 sm:$0xff]  ;;  %v606_v28 = vmov 0  }
  0xd4   : > { %v412_v32 = vadd.f32 %v411_v31, %v410_v30  ;;  %570 = vset.pattern.permute.xlu1 %v606_v28  ;;  %571 = vset.pattern.permute.xlu0 %v606_v28  ;;  %v531_v30 = vld [vmem:[%s722_s4 + $0x3] ss:$0 sm:$0xff] }
  0xd6   : > { %v413_v33 = vrot.slane %v412_v32, 2 }
  0xd8   : > { %v414_v34 = vadd.f32 %v413_v33, %v412_v32 }
  0xda   : > { %v415_v35 = vrot.slane %v414_v34, 1 }
  0xdc   : > { %v416_v36 = vadd.f32 %v415_v35, %v414_v34 }
  0xde   : > { %v417_v37 = vmul.f32 0.5, %v416_v36 }
  0xe0   : > { %v418_v38 = vsub.f32 %v371_v29, %v417_v37 }
  0xe2   : > { %v419_v39 = vmul.f32 %v418_v38, %v418_v38 }
  0xe4   : > { %v420_v40 = vsel %vm409_vm8, %v419_v39, 0.0 }
  0xe5   : > { %v421_v42 = vrot.slane %v420_v40, 4 }
  0xe7   : > { %v422_v47 = vadd.f32 %v421_v42, %v420_v40 }
  0xe9   : > { %v423_v52 = vrot.slane %v422_v47, 2 }
  0xeb   : > { %v424_v55 = vadd.f32 %v423_v52, %v422_v47 }
  0xed   : > { %v425_v58 = vrot.slane %v424_v55, 1 }
  0xef   : > { %v426_v61 = vadd.f32 %v425_v58, %v424_v55 }
  0xf1   : > { %v427_v1 = vmul.f32 0.5, %v426_v61 }
  0xf3   : > { %v428_v4 = vadd.f32 1e-05, %v427_v1 }
  0xf5   : > { %572 = vrsqrt.f32 %v428_v4 }
 0x102   : > { %v573_v10 = vpop.eup %572 }
 0x103   : > { %v430_v11 = vmul.f32 %v573_v10, %v418_v38 }
 0x105   : > { %v435_v13 = vmul.f32 %v527_v12, %v430_v11 }
 0x107   : > { %v440_v20 = vadd.f32 %v528_v16, %v435_v13 }
 0x109   : > { %v455_v25 = vmul.f32 %v530_v22, %v440_v20 }
 0x10b   : > { %v456_v27 = vsel %vm409_vm8, %v455_v25, 0.0 }
 0x193   : > { %v365_v43 = vpop.f32.mrf.mxu0 }
 0x194   : > { %v366_v44 = vadd.f32 %v523_v41, %v365_v43 }
 0x195   : > { %v541_v45 = vpop.f32.mrf.mxu0 }
 0x196   : > { %v375_v46 = vsel %vm374_vm9, %v366_v44, 0.0 }
 0x197   : > { %v368_v48 = vpop.f32.mrf.mxu0  ;;  %v376_v49 = vrot.slane %v375_v46, 4 }
 0x199   : > { %v542_v50 = vpop.f32.mrf.mxu0  ;;  %v377_v51 = vadd.f32 %v376_v49, %v375_v46 }
 0x19b   : > { %v378_v53 = vrot.slane %v377_v51, 2 }
 0x19d   : > { %v379_v54 = vadd.f32 %v378_v53, %v377_v51 }
 0x19f   : > { %v380_v56 = vrot.slane %v379_v54, 1 }
 0x1a1   : > { %v381_v57 = vadd.f32 %v380_v56, %v379_v54 }
 0x1a3   : > { %v383_v59 = vmul.f32 0.5, %v381_v57 }
 0x1a5   : > { %v384_v60 = vsub.f32 %v366_v44, %v383_v59 }
 0x1a7   : > { %v385_v62 = vmul.f32 %v384_v60, %v384_v60 }
 0x1a9   : > { %v386_v63 = vsel %vm374_vm9, %v385_v62, 0.0 }
 0x1aa   : > { %v387_v0 = vrot.slane %v386_v63, 4 }
 0x1ac   : > { %v388_v2 = vadd.f32 %v387_v0, %v386_v63 }
 0x1ae   : > { %v389_v3 = vrot.slane %v388_v2, 2 }
 0x1b0   : > { %v390_v5 = vadd.f32 %v389_v3, %v388_v2 }
 0x1b2   : > { %v391_v6 = vrot.slane %v390_v5, 1 }
 0x1b4   : > { %v392_v7 = vadd.f32 %v391_v6, %v390_v5 }
 0x1b6   : > { %v393_v8 = vmul.f32 0.5, %v392_v7 }
 0x1b8   : > { %v394_v9 = vadd.f32 1e-05, %v393_v8 }
 0x1ba   : > { %574 = vrsqrt.f32 %v394_v9 }
 0x1c7   : > { %v575_v14 = vpop.eup %574 }
 0x1c8   : > { %v396_v17 = vmul.f32 %v575_v14, %v384_v60 }
 0x1ca   : > { %v401_v19 = vmul.f32 %v525_v15, %v396_v17 }
 0x1cc   : > { %v406_v23 = vadd.f32 %v526_v18, %v401_v19 }
 0x1ce   : > { %v446_v24 = vmul.f32 %v529_v21, %v406_v23 }
 0x1d0   : > { %v447_v26 = vsel %vm374_vm9, %v446_v24, 0.0 }
 0x1d1   : > { %448 = vadd.xlane.f32.xlu0 %v447_v26 }
 0x1d5   : > { %457 = vadd.xlane.f32.xlu0 %v456_v27 }
 0x25a   : > { %v449_v29 = vpop.xlane.xlu0 %448 }
 0x25e   : > { %v458_v31 = vpop.xlane.xlu0 %457 }
 0x25f   : > { %v459_v32 = vadd.f32 %v458_v31, %v449_v29 }
 0x261   : > { %v465_v33 = vadd.f32 %v531_v30, %v459_v32 }
 0x263   : > { %v532_v34 = vmul.f32 -1.442695, %v465_v33 }
 0x265   : > { %576 = vpow2.f32 %v532_v34 }
 0x272   : > { %v577_v35 = vpop.eup %576 }
 0x273   : > { %v469_v36 = vadd.f32 1.0, %v577_v35 }
 0x275   : > { %578 = vrcp.f32 %v469_v36 }
 0x282   : > { %v579_v37 = vpop.eup %578 }
 0x283   : > { %v472_v38 = vmul.f32 100.0, %v579_v37 }
 0x285   : > { %475 = vperm.xlu1 %570, %v472_v38  }
 0x300   : > { %v476_v39 = vpop.permute.xlu1 %475 }
 0x301   : > { %478 = vst [vmem:[%s723_s5] sm:$0x3] %v476_v39 }
 0x302 PF: > { %p12_p11 = scmp.ge.s32.totalorder %s652_s22, 4   ;;  %s724_s18 = smov %s598_s19 }
 0x303   : > { %s725_s19 = smov %s659_s25  ;;  %s726_s20 = smov %s652_s22 }
 0x304   :  { %14 = sbr.rel (!%p12_p11) target bundleno = 2 (0x2), region = 124 }

</bundles_post_ra>
